<compile_context>
chip_gen: v6e
topology: v6e:2x2x1
jax: 0.10.0
libtpu: 0.0.40
codegen_flags: <defaults>
</compile_context>

<pallas_src>
import jax
import jax.numpy as jnp
from jax.experimental import pallas as pl
from jax.experimental.pallas import tpu as pltpu


def _round_up(n, m):
    return ((n + m - 1) // m) * m


def fcnet_kernel(xt_ref, w1_ref, b1_ref, w2_ref, b2_ref, ot_ref):
    # xt_ref: [16, TB] bf16 (batch in lanes); weights/biases resident across grid.
    x = xt_ref[...]                                                    # [16, TB]
    # fc1 + ReLU (bf16 MXU dot, f32 accumulate; bias/activation math in f32)
    h = jnp.dot(w1_ref[...], x, preferred_element_type=jnp.float32)    # [8, TB]
    h = jnp.maximum(h + b1_ref[...], 0.0)
    # fc3 (f32 dot; compute is free here — the kernel is HBM-bandwidth bound)
    logits = jnp.dot(w2_ref[...], h, preferred_element_type=jnp.float32)
    logits = logits + b2_ref[...]                                      # [4, TB]
    # softmax over the feature axis (sublanes); normalize via EUP approx recip
    m = jnp.max(logits, axis=0, keepdims=True)
    e = jnp.exp(logits - m)
    inv = pl.reciprocal(jnp.sum(e, axis=0, keepdims=True), approx=True)
    ot_ref[...] = (e * inv).astype(ot_ref.dtype)


def fcnet_forward(x, w1, b1, w2, b2, *, tb=4096):
    """x: [B, num_input] f32; w1: [8, num_input]; b1: [8]; w2: [num_out, 8]; b2: [num_out]."""
    # NOTE: for genuinely tiny batches (B ~ a few) plain jnp/XLA is as fast or
    # faster than any pallas_call; this kernel targets large-B throughput.
    B, num_input = x.shape
    hidden = w1.shape[0]
    num_output = w2.shape[0]

    # Batch tile: lane-dense (multiple of 128) and large enough to hide the
    # ~0.35 us per-step overhead, but never bigger than needed for small B.
    # Per-tile footprint (bf16 in + f32 out, double-buffered) is < 1 MiB at
    # tb=4096, so it fits comfortably inside v7x's 64 MiB VMEM.
    tb = min(tb, _round_up(B, 128))
    bp = _round_up(B, tb)

    # bf16 on the HBM->VMEM path for x (the dominant HBM traffic).
    xt = jnp.transpose(x).astype(jnp.bfloat16)                         # [num_input, B]
    if bp != B:
        xt = jnp.pad(xt, ((0, 0), (0, bp - B)))

    w1_bf = w1.astype(jnp.bfloat16)                                    # [hidden, num_input]
    b1_c = b1.reshape(hidden, 1).astype(jnp.float32)
    w2_f = w2.astype(jnp.float32)                                      # [num_output, hidden]
    b2_c = b2.reshape(num_output, 1).astype(jnp.float32)

    grid = (bp // tb,)
    out_t = pl.pallas_call(
        fcnet_kernel,
        out_shape=jax.ShapeDtypeStruct((num_output, bp), jnp.float32),
        grid=grid,
        in_specs=[
            pl.BlockSpec((num_input, tb), lambda i: (0, i)),        # x^T, tiled over batch
            pl.BlockSpec((hidden, num_input), lambda i: (0, 0)),    # W1 resident in VMEM
            pl.BlockSpec((hidden, 1), lambda i: (0, 0)),            # b1 resident
            pl.BlockSpec((num_output, hidden), lambda i: (0, 0)),   # W2 resident
            pl.BlockSpec((num_output, 1), lambda i: (0, 0)),        # b2 resident
        ],
        out_specs=pl.BlockSpec((num_output, tb), lambda i: (0, i)),
        compiler_params=pltpu.CompilerParams(
            dimension_semantics=("parallel",),   # shard batch tiles across TCs (v7x)
            vmem_limit_bytes=32 * 1024 * 1024,   # explicit, plenty of headroom everywhere
        ),
    )(xt, w1_bf, b1_c, w2_f, b2_c)
    return jnp.transpose(out_t)[:B]                                    # [B, num_output]


def init_params(key, num_input=16, num_output=4, hidden=8):
    k1, k2, k3, k4 = jax.random.split(key, 4)
    # torch.nn.init.uniform_(weight, -1, 1) for both layers (PyTorch [out, in]).
    w1 = jax.random.uniform(k1, (hidden, num_input), jnp.float32, -1.0, 1.0)
    w2 = jax.random.uniform(k2, (num_output, hidden), jnp.float32, -1.0, 1.0)
    # Biases keep the default nn.Linear init: U(-1/sqrt(fan_in), 1/sqrt(fan_in)).
    bound1 = 1.0 / jnp.sqrt(jnp.float32(num_input))
    bound2 = 1.0 / jnp.sqrt(jnp.float32(hidden))
    b1 = jax.random.uniform(k3, (hidden,), jnp.float32, -bound1, bound1)
    b2 = jax.random.uniform(k4, (num_output,), jnp.float32, -bound2, bound2)
    return w1, b1, w2, b2


def _reference(x, w1, b1, w2, b2):
    # Mirror the kernel's bf16 quantization of x / W1 so the comparison only
    # measures kernel numerics (softmax, approx reciprocal), not cast error.
    xq = x.astype(jnp.bfloat16).astype(jnp.float32)
    w1q = w1.astype(jnp.bfloat16).astype(jnp.float32)
    h = jnp.maximum(xq @ w1q.T + b1, 0.0)
    return jax.nn.softmax(h @ w2.T + b2, axis=1)


if __name__ == "__main__":
    key = jax.random.PRNGKey(0)
    kx, kp = jax.random.split(key)
    num_input, num_output = 16, 4
    w1, b1, w2, b2 = init_params(kp, num_input, num_output)

    # Small case (matches the module's toy usage: batch=2, 16 features).
    B = 2
    x = jax.random.normal(kx, (B, num_input), jnp.float32)
    out = jax.block_until_ready(fcnet_forward(x, w1, b1, w2, b2))
    ref = _reference(x, w1, b1, w2, b2)
    assert out.shape == (B, num_output)
    assert jnp.allclose(out, ref, atol=2e-2, rtol=2e-2)
    assert jnp.allclose(jnp.sum(out, axis=1), 1.0, atol=2e-2)

    # Multi-tile case: exercises batch tiling, padding and resident weights.
    B2 = 300
    x2 = jax.random.normal(jax.random.PRNGKey(1), (B2, num_input), jnp.float32)
    out2 = jax.block_until_ready(fcnet_forward(x2, w1, b1, w2, b2, tb=128))
    ref2 = _reference(x2, w1, b1, w2, b2)
    assert out2.shape == (B2, num_output)
    assert jnp.allclose(out2, ref2, atol=2e-2, rtol=2e-2)

    print("KERNEL_OK")
</pallas_src>

<mosaic_0001>
module attributes {stable_mosaic.version = 11 : i64} {
  func.func @fcnet_kernel(%arg0: i32, %arg1: memref<16x128xbf16, #tpu.memory_space<vmem>>, %arg2: memref<8x16xbf16, #tpu.memory_space<vmem>>, %arg3: memref<8x1xf32, #tpu.memory_space<vmem>>, %arg4: memref<4x8xf32, #tpu.memory_space<vmem>>, %arg5: memref<4x1xf32, #tpu.memory_space<vmem>>, %arg6: memref<4x128xf32, #tpu.memory_space<vmem>>) attributes {dimension_semantics = [#tpu.dimension_semantics<parallel>], iteration_bounds = array<i64: 1>, scalar_prefetch = 0 : i64, scratch_operands = 0 : i64, tpu.core_type = #tpu.core_type<tc>, window_params = [{transform_indices = @transform_0, window_bounds = array<i64: 16, 128>}, {pipeline_mode = #tpu.pipeline_mode<synchronous>, transform_indices = @transform_1, window_bounds = array<i64: 8, 16>}, {pipeline_mode = #tpu.pipeline_mode<synchronous>, transform_indices = @transform_2, window_bounds = array<i64: 8, 1>}, {pipeline_mode = #tpu.pipeline_mode<synchronous>, transform_indices = @transform_3, window_bounds = array<i64: 4, 8>}, {pipeline_mode = #tpu.pipeline_mode<synchronous>, transform_indices = @transform_4, window_bounds = array<i64: 4, 1>}, {transform_indices = @transform_5, window_bounds = array<i64: 4, 128>}]} {
    %c0 = arith.constant 0 : index
    %c0_0 = arith.constant 0 : index
    %0 = vector.load %arg1[%c0, %c0_0] : memref<16x128xbf16, #tpu.memory_space<vmem>>, vector<16x128xbf16>
    %c0_1 = arith.constant 0 : index
    %c0_2 = arith.constant 0 : index
    %1 = vector.load %arg2[%c0_1, %c0_2] : memref<8x16xbf16, #tpu.memory_space<vmem>>, vector<8x16xbf16>
    %cst = arith.constant dense<0.000000e+00> : vector<8x128xf32>
    %2 = tpu.matmul %1, %0, %cst {dimension_numbers = #tpu.dot_dimension_numbers<[1], [0], [0], [1], [0, 0, 1, 1], [], []>} : vector<8x16xbf16>, vector<16x128xbf16>, vector<8x128xf32> -> vector<8x128xf32>
    %c0_3 = arith.constant 0 : index
    %c0_4 = arith.constant 0 : index
    %3 = vector.load %arg3[%c0_3, %c0_4] : memref<8x1xf32, #tpu.memory_space<vmem>>, vector<8x1xf32>
    %4 = vector.broadcast %3 : vector<8x1xf32> to vector<8x128xf32>
    %5 = arith.addf %2, %4 : vector<8x128xf32>
    %cst_5 = arith.constant 0.000000e+00 : f32
    %6 = vector.broadcast %cst_5 : f32 to vector<8x128xf32>
    %7 = arith.maximumf %5, %6 : vector<8x128xf32>
    %c0_6 = arith.constant 0 : index
    %c0_7 = arith.constant 0 : index
    %8 = vector.load %arg4[%c0_6, %c0_7] : memref<4x8xf32, #tpu.memory_space<vmem>>, vector<4x8xf32>
    %cst_8 = arith.constant dense<0.000000e+00> : vector<4x128xf32>
    %9 = tpu.matmul %8, %7, %cst_8 {dimension_numbers = #tpu.dot_dimension_numbers<[1], [0], [0], [1], [0, 0, 1, 1], [], []>} : vector<4x8xf32>, vector<8x128xf32>, vector<4x128xf32> -> vector<4x128xf32>
    %c0_9 = arith.constant 0 : index
    %c0_10 = arith.constant 0 : index
    %10 = vector.load %arg5[%c0_9, %c0_10] : memref<4x1xf32, #tpu.memory_space<vmem>>, vector<4x1xf32>
    %11 = vector.broadcast %10 : vector<4x1xf32> to vector<4x128xf32>
    %12 = arith.addf %9, %11 : vector<4x128xf32>
    %cst_11 = arith.constant dense<0xFF800000> : vector<128xf32>
    %13 = vector.multi_reduction <maximumf>, %12, %cst_11 [0] : vector<4x128xf32> to vector<128xf32>
    %14 = vector.shape_cast %13 : vector<128xf32> to vector<1x128xf32>
    %15 = vector.broadcast %14 : vector<1x128xf32> to vector<4x128xf32>
    %16 = arith.subf %12, %15 : vector<4x128xf32>
    %17 = math.exp %16 : vector<4x128xf32>
    %cst_12 = arith.constant dense<0.000000e+00> : vector<128xf32>
    %18 = vector.multi_reduction <add>, %17, %cst_12 [0] : vector<4x128xf32> to vector<128xf32>
    %19 = vector.shape_cast %18 : vector<128xf32> to vector<1x128xf32>
    %20 = tpu.reciprocal %19 {approx = true} : vector<1x128xf32> -> vector<1x128xf32>
    %21 = vector.broadcast %20 : vector<1x128xf32> to vector<4x128xf32>
    %22 = arith.mulf %17, %21 : vector<4x128xf32>
    %c0_13 = arith.constant 0 : index
    %c0_14 = arith.constant 0 : index
    %23 = vector.load %arg6[%c0_13, %c0_14] : memref<4x128xf32, #tpu.memory_space<vmem>>, vector<4x128xf32>
    tpu.vector_store %arg6[%c0_13, %c0_14], %22 {strides = array<i32>} : memref<4x128xf32, #tpu.memory_space<vmem>>, vector<4x128xf32>,
    return
  }
  func.func @transform_0(%arg0: i32) -> (i32, i32) {
    %c0_i32 = arith.constant 0 : i32
    %c0_i32_0 = arith.constant 0 : i32
    return %c0_i32, %arg0 : i32, i32
  }
  func.func @transform_1(%arg0: i32) -> (i32, i32) {
    %c0_i32 = arith.constant 0 : i32
    %c0_i32_0 = arith.constant 0 : i32
    %c0_i32_1 = arith.constant 0 : i32
    return %c0_i32, %c0_i32_0 : i32, i32
  }
  func.func @transform_2(%arg0: i32) -> (i32, i32) {
    %c0_i32 = arith.constant 0 : i32
    %c0_i32_0 = arith.constant 0 : i32
    %c0_i32_1 = arith.constant 0 : i32
    return %c0_i32, %c0_i32_0 : i32, i32
  }
  func.func @transform_3(%arg0: i32) -> (i32, i32) {
    %c0_i32 = arith.constant 0 : i32
    %c0_i32_0 = arith.constant 0 : i32
    %c0_i32_1 = arith.constant 0 : i32
    return %c0_i32, %c0_i32_0 : i32, i32
  }
  func.func @transform_4(%arg0: i32) -> (i32, i32) {
    %c0_i32 = arith.constant 0 : i32
    %c0_i32_0 = arith.constant 0 : i32
    %c0_i32_1 = arith.constant 0 : i32
    return %c0_i32, %c0_i32_0 : i32, i32
  }
  func.func @transform_5(%arg0: i32) -> (i32, i32) {
    %c0_i32 = arith.constant 0 : i32
    %c0_i32_0 = arith.constant 0 : i32
    return %c0_i32, %arg0 : i32, i32
  }
}

</mosaic_0001>

<bundles_post_ra>
// kernel: tpu_custom_call.1
= control target key start
LH: loop header
LB: loop body
LE: loop exit
PB: predicated region body
PF: predicated region fallthrough
CT: control target
= control target key end

     0   :  { %v248_v1 = vmov 0.0   ;;  %vm249_vm0 = vmmov 0   ;;  %vm37_vm1 = vcmask 130048   ;;  %s300_s0 = inlined_call_operand.vmem [shape: bf16[16,128], index: 0, kind: input, shape index: {}]   ;;  %s301_s1 = inlined_call_operand.vmem [shape: bf16[8,16], index: 1, kind: input, shape index: {}]   ;;  %s302_s2 = inlined_call_operand.vmem [shape: f32[8,1], index: 2, kind: input, shape index: {}]   ;;  %s303_s3 = inlined_call_operand.vmem [shape: f32[4,8], index: 3, kind: input, shape index: {}]   ;;  %s304_s4 = inlined_call_operand.vmem [shape: f32[4,1], index: 4, kind: input, shape index: {}]   ;;  %s305_s5 = inlined_call_operand.hbm [shape: f32[4,128], index: 5, kind: output, shape index: {}]  }
   0x1   :  { %v221_v0 = vld [vmem:[%s300_s0] sm:$0xff]   ;;  %205 = vmatprep.subr.bf16.mxu0 %v248_v1  ;;  %211 = vmatprep.subr.mxu1 %v248_v1 }
   0x2   :  { %v25_v2 = vld [vmem:[%s302_s2] sm:$0xff]  ;;  %206 = vmatpush3.bf16.msra.mxu0 %v221_v0  ;;  %207 = vmatprep.mubr.msk.bf16.mxu0 %vm249_vm0, %v248_v1 }
   0x3   :  { %v24_v3 = vld [vmem:[%s301_s1] sm:$0xf] }
   0x4   :  { %10 = vsyncpa [#allocation3], 0  ;;  %v250_v4 = vmov 0   ;;  %213 = vmatprep.mubr.msk.f32.mxu1 %vm249_vm0, %v248_v1  ;;  %v83_v5 = vld [vmem:[%s304_s4] sm:$0xf]  ;;  %vm89_vm2 = vcmask 64512  }
   0x5   :  { %220 = vset.pattern.permute.xlu0 %v250_v4  ;;  %208 = vmatmul.mubr.msk.bf16.vlgmr.msra.gmra.mxu0 %vm37_vm1, %v24_v3  ;;  %v82_v11 = vld [vmem:[%s303_s3] sm:$0xf]  ;;  %vm163_vm3 = vcmask 1043456   ;;  %s251_s1 = smov [#allocation2]  }
   0x6   :  { %28 = vperm.xlu0 %220, %v25_v2   ;;  %s190_s3 = sshll.u32 %s251_s1, 4  ;;  %s191_s3 = int_to_ptr.vmem [resolvable:$true] %s190_s3 }
   0x7   :  { %s226_s4 = scalar_lea.vmem %s191_s3, 64  ;;  %p231_p1 = scmp.lt.s32.totalorder %s191_s3, %s191_s3 }
   0x8   :  { %p227_p0 = scmp.ne.s32.totalorder %s191_s3, %s226_s4  ;;  %p232_p2 = scmp.lt.s32.totalorder %s226_s4, %s226_s4 }
   0xa   :  { %86 = vperm.xlu0 %220, %v83_v5   ;;  %p233_p3 = por %p232_p2, %p231_p1 }
   0xc   :  { %p234_p4 = pnand %p233_p3, %p227_p0 }
  0x81   :  { %v29_v6 = vpop.permute.xlu0 %28 }
  0x85   :  { %v87_v14 = vpop.permute.xlu0 %86 }
  0xc5   :  { %v75_v7 = vpop.f32.mrf.mxu0 }
  0xc6   :  { %v76_v8 = vadd.f32 %v75_v7, %v29_v6 }
  0xc7   :  { %v209_v9 = vpop.f32.mrf.mxu0 }
  0xc8   :  { %v81_v10 = vmax.f32 %v76_v8, 0.0 }
  0xc9   :  { %v78_v12 = vpop.f32.mrf.mxu0 }
  0xca   :  { %212 = vmatpush3.msra.mxu1 %v81_v10 }
  0xcb   :  { %v210_v13 = vpop.f32.mrf.mxu0  ;;  %214 = vmatmul.mubr.msk.f32.vlgmr.msra.gmra.mxu1 %vm89_vm2, %v82_v11 }
 0x18b   :  { %v159_v15 = vpop.f32.mrf.mxu1 }
 0x18c   :  { %v160_v16 = vadd.f32 %v159_v15, %v87_v14 }
 0x18d   :  { %v215_v17 = vpop.f32.mrf.mxu1 }
 0x18e   :  { %v164_v18 = vsel %vm163_vm3, %v160_v16, -inf }
 0x18f   :  { %v165_v19 = vrot.slane %v164_v18, 4 }
 0x191   :  { %v166_v20 = vmax.f32 %v164_v18, %v165_v19 }
 0x193   :  { %v167_v21 = vrot.slane %v166_v20, 2 }
 0x195   :  { %v168_v22 = vmax.f32 %v166_v20, %v167_v21 }
 0x197   :  { %v169_v23 = vrot.slane %v168_v22, 1 }
 0x199   :  { %v170_v24 = vmax.f32 %v168_v22, %v169_v23 }
 0x19b   :  { %v171_v25 = vsub.f32 %v160_v16, %v170_v24 }
 0x19d   :  { %v172_v26 = vmul.f32 1.442695, %v171_v25 }
 0x19f   :  { %222 = vpow2.f32 %v172_v26 }
 0x1ac   :  { %v223_v27 = vpop.eup %222 }
 0x1ad   :  { %v174_v28 = vsel %vm163_vm3, %v223_v27, 0.0 }
 0x1ae   :  { %v175_v29 = vrot.slane %v174_v28, 4 }
 0x1b0   :  { %v176_v30 = vadd.f32 %v175_v29, %v174_v28 }
 0x1b2   :  { %v177_v31 = vrot.slane %v176_v30, 2 }
 0x1b4   :  { %v178_v32 = vadd.f32 %v177_v31, %v176_v30 }
 0x1b6   :  { %v179_v33 = vrot.slane %v178_v32, 1 }
 0x1b8   :  { %v180_v34 = vadd.f32 %v179_v33, %v178_v32 }
 0x1ba   :  { %224 = vrcp.f32 %v180_v34 }
 0x1c7   :  { %v225_v35 = vpop.eup %224 }
 0x1c8   :  { %v182_v36 = vmul.f32 %v225_v35, %v223_v27 }
 0x1ca   :  { %183 = vst [vmem:[#allocation2] sm:$0xf] %v182_v36 }
 0x1cb   :  { %237 = shalt.err (!%p234_p4)
}
 0x1cc   :  { %193 = dma.vmem_to_hbm [thread:$0]  %s191_s3, 64, %s305_s5, [#allocation3]  }
 0x1cd   :  { %246 = dma.done.wait [#allocation3], 64  }
 0x1ce   :  { %247 = vsyncadd [#allocation3], 4294967232 }
 0x1cf   :  { %197 = vsyncpa [#allocation3], 1 }

</bundles_post_ra>
